<compile_context>
chip_gen: v7x
topology: tpu7x:2x2x1
jax: 0.10.0
libtpu: 0.0.40
codegen_flags: <defaults>
</compile_context>

<pallas_src>
import functools

import jax
import jax.numpy as jnp
from jax.experimental import pallas as pl
from jax.experimental.pallas import tpu as pltpu


def _round_up(n, m):
    return ((n + m - 1) // m) * m


def _gsa_kernel(x_ref, pos_ref, batch_ref,
                w1x_ref, w1p_ref, b1_ref, w2_ref, b2_ref, w3_ref, b3_ref,
                out_ref, *, num_graphs):
    """One point-tile of the point-wise MLP + per-graph max accumulation.

    x_ref     : [TILE_N, C]      point features (f32)
    pos_ref   : [TILE_N, 3]      point coordinates (f32)
    batch_ref : [TILE_N, 1]      int32 graph index per point (-1 for padding rows)
    w*/b*     : MLP parameters, hidden dims pre-padded to 128 lanes (weights bf16)
    out_ref   : [B_pad, H3_pad]  f32 pooled features, resident across the grid
    """
    step = pl.program_id(0)

    @pl.when(step == 0)
    def _init():
        out_ref[...] = jnp.zeros_like(out_ref)

    # ---- point-wise MLP: bf16 MXU matmuls, f32 accumulation, ReLU on VPU ----
    xb = x_ref[...].astype(jnp.bfloat16)
    pb = pos_ref[...].astype(jnp.bfloat16)

    # layer 1: split contraction (x | pos) -> no wrapper-side concat needed.
    h = (jnp.dot(xb, w1x_ref[...], preferred_element_type=jnp.float32)
         + jnp.dot(pb, w1p_ref[...], preferred_element_type=jnp.float32)
         + b1_ref[...])
    h = jnp.maximum(h, 0.0).astype(jnp.bfloat16)

    h = jnp.dot(h, w2_ref[...], preferred_element_type=jnp.float32) + b2_ref[...]
    h = jnp.maximum(h, 0.0).astype(jnp.bfloat16)

    h = jnp.dot(h, w3_ref[...], preferred_element_type=jnp.float32) + b3_ref[...]
    h = jnp.maximum(h, 0.0)                      # [TILE_N, H3_pad] f32, all >= 0

    # ---- global_max_pool(h, batch): masked segment-max, one full-block update ----
    bidx = batch_ref[...]                        # [TILE_N, 1] int32
    pooled_rows = []
    for g in range(num_graphs):                  # num_graphs is a static Python int
        mask = (bidx == g)                       # [TILE_N, 1], lane-broadcasts over H3
        pooled_rows.append(
            jnp.max(jnp.where(mask, h, 0.0), axis=0, keepdims=True))   # [1, H3_pad]
    pad_rows = out_ref.shape[0] - num_graphs
    if pad_rows:
        pooled_rows.append(jnp.zeros((pad_rows, h.shape[1]), jnp.float32))
    pooled = jnp.concatenate(pooled_rows, axis=0)                       # [B_pad, H3_pad]
    out_ref[...] = jnp.maximum(out_ref[...], pooled)


def global_set_abstraction(x, pos, batch, params, num_graphs, *, tile_n=2048):
    """JAX wrapper reproducing GlobalSetAbstraction.forward.

    x     : [N, C] float32 point features
    pos   : [N, 3] float32 point coordinates
    batch : [N]    int32   graph id per point (values in [0, num_graphs))
    """
    (w1, b1), (w2, b2), (w3, b3) = params
    N, C = x.shape
    H1, H2, H3 = w1.shape[1], w2.shape[1], w3.shape[1]

    # ---- pad feature dims to 128 lanes; pad graph rows to 8 sublanes ----
    H1p, H2p, H3p = (_round_up(h, 128) for h in (H1, H2, H3))
    Bp = _round_up(num_graphs, 8)

    w1_full = jnp.zeros((C + 3, H1p), jnp.float32).at[:, :H1].set(w1)
    w1x = w1_full[:C].astype(jnp.bfloat16)        # [C, H1p]
    w1p = w1_full[C:].astype(jnp.bfloat16)        # [3, H1p]
    b1p = jnp.zeros((1, H1p), jnp.float32).at[0, :H1].set(b1)
    w2p = jnp.zeros((H1p, H2p), jnp.float32).at[:H1, :H2].set(w2).astype(jnp.bfloat16)
    b2p = jnp.zeros((1, H2p), jnp.float32).at[0, :H2].set(b2)
    w3p = jnp.zeros((H2p, H3p), jnp.float32).at[:H2, :H3].set(w3).astype(jnp.bfloat16)
    b3p = jnp.zeros((1, H3p), jnp.float32).at[0, :H3].set(b3)

    # ---- tile / pad the point axis; padded points get batch=-1 -> masked out ----
    # TILE_N=2048 keeps the per-step footprint (f32 acts padded to 128 lanes,
    # double-buffered inputs) a few MiB -- well under v5e's 16 MiB scoped default
    # and v7x's 64 MiB physical VMEM -- while keeping per-step overhead amortized.
    tile_n = min(tile_n, _round_up(N, 8))
    Np = _round_up(N, tile_n)
    xp = jnp.zeros((Np, C), jnp.float32).at[:N].set(x.astype(jnp.float32))
    posp = jnp.zeros((Np, 3), jnp.float32).at[:N].set(pos.astype(jnp.float32))
    batchp = jnp.full((Np, 1), -1, jnp.int32).at[:N, 0].set(batch.astype(jnp.int32))

    grid = (Np // tile_n,)
    const2d = lambda i: (0, 0)                    # weights stay VMEM-resident

    kernel = functools.partial(_gsa_kernel, num_graphs=num_graphs)

    pooled = pl.pallas_call(
        kernel,
        out_shape=jax.ShapeDtypeStruct((Bp, H3p), jnp.float32),
        grid_spec=pltpu.PrefetchScalarGridSpec(
            num_scalar_prefetch=0,
            grid=grid,
            in_specs=[
                pl.BlockSpec((tile_n, C), lambda i: (i, 0)),
                pl.BlockSpec((tile_n, 3), lambda i: (i, 0)),
                pl.BlockSpec((tile_n, 1), lambda i: (i, 0)),
                pl.BlockSpec((C, H1p), const2d),
                pl.BlockSpec((3, H1p), const2d),
                pl.BlockSpec((1, H1p), const2d),
                pl.BlockSpec((H1p, H2p), const2d),
                pl.BlockSpec((1, H2p), const2d),
                pl.BlockSpec((H2p, H3p), const2d),
                pl.BlockSpec((1, H3p), const2d),
            ],
            out_specs=pl.BlockSpec((Bp, H3p), const2d),
        ),
        compiler_params=pltpu.CompilerParams(
            dimension_semantics=("arbitrary",)),   # point axis is a reduction
    )(xp, posp, batchp, w1x, w1p, b1p, w2p, b2p, w3p, b3p)

    out_x = pooled[:num_graphs, :H3]               # strip lane / sublane padding
    pos_out = jnp.zeros((num_graphs, 3), dtype=pos.dtype)
    batch_out = jnp.arange(num_graphs, dtype=jnp.int32)
    return out_x, pos_out, batch_out


def init_mlp_params(key, dims):
    """Deterministic Linear-layer params for MLP([d0, d1, d2, d3])."""
    params = []
    for i in range(len(dims) - 1):
        key, kw, kb = jax.random.split(key, 3)
        fan_in = dims[i]
        w = jax.random.normal(kw, (dims[i], dims[i + 1]), jnp.float32) / jnp.sqrt(fan_in)
        b = 0.01 * jax.random.normal(kb, (dims[i + 1],), jnp.float32)
        params.append((w, b))
    return params


if __name__ == "__main__":
    # Small shapes consistent with the module: N points across B graphs,
    # C feature channels, 3-D coordinates, MLP [C+3, 32, 32, 64].
    N, C, B = 32, 4, 2
    H1, H2, H3 = 32, 32, 64

    key = jax.random.PRNGKey(0)
    kx, kp, kparams = jax.random.split(key, 3)

    x = jax.random.normal(kx, (N, C), jnp.float32)
    pos = jax.random.normal(kp, (N, 3), jnp.float32)
    batch = jnp.concatenate([
        jnp.zeros((N // 2,), jnp.int32),
        jnp.ones((N - N // 2,), jnp.int32),
    ])  # first half of the points -> graph 0, second half -> graph 1

    params = init_mlp_params(kparams, (C + 3, H1, H2, H3))

    out_x, out_pos, out_batch = global_set_abstraction(x, pos, batch, params, B)
    jax.block_until_ready((out_x, out_pos, out_batch))

    assert out_x.shape == (B, H3)
    assert out_pos.shape == (B, 3)
    assert out_batch.shape == (B,)

    # Sanity check against a pure-JAX f32 reference of the same forward pass.
    # (kernel runs its matmuls in bf16 with f32 accumulation -> relaxed tolerance)
    h_ref = jnp.concatenate([x, pos], axis=1)
    for (w, b) in params:
        h_ref = jnp.maximum(h_ref @ w + b, 0.0)
    ref = jnp.stack([
        jnp.max(jnp.where((batch == g)[:, None], h_ref, -jnp.inf), axis=0)
        for g in range(B)
    ])
    assert jnp.allclose(out_x, ref, atol=3e-2, rtol=3e-2), (
        jnp.max(jnp.abs(out_x - ref)))

    print("KERNEL_OK")
</pallas_src>

<mosaic_0001>
module attributes {stable_mosaic.version = 11 : i64} {
  func.func @_gsa_kernel(%arg0: i32, %arg1: memref<32x4xf32, #tpu.memory_space<vmem>>, %arg2: memref<32x3xf32, #tpu.memory_space<vmem>>, %arg3: memref<32x1xi32, #tpu.memory_space<vmem>>, %arg4: memref<4x128xbf16, #tpu.memory_space<vmem>>, %arg5: memref<3x128xbf16, #tpu.memory_space<vmem>>, %arg6: memref<1x128xf32, #tpu.memory_space<vmem>>, %arg7: memref<128x128xbf16, #tpu.memory_space<vmem>>, %arg8: memref<1x128xf32, #tpu.memory_space<vmem>>, %arg9: memref<128x128xbf16, #tpu.memory_space<vmem>>, %arg10: memref<1x128xf32, #tpu.memory_space<vmem>>, %arg11: memref<8x128xf32, #tpu.memory_space<vmem>>) attributes {dimension_semantics = [#tpu.dimension_semantics<arbitrary>], iteration_bounds = array<i64: 1>, scalar_prefetch = 0 : i64, scratch_operands = 0 : i64, tpu.core_type = #tpu.core_type<tc>, window_params = [{transform_indices = @transform_0, window_bounds = array<i64: 32, 4>}, {transform_indices = @transform_1, window_bounds = array<i64: 32, 3>}, {transform_indices = @transform_2, window_bounds = array<i64: 32, 1>}, {pipeline_mode = #tpu.pipeline_mode<synchronous>, transform_indices = @transform_3, window_bounds = array<i64: 4, 128>}, {pipeline_mode = #tpu.pipeline_mode<synchronous>, transform_indices = @transform_4, window_bounds = array<i64: 3, 128>}, {pipeline_mode = #tpu.pipeline_mode<synchronous>, transform_indices = @transform_5, window_bounds = array<i64: 1, 128>}, {pipeline_mode = #tpu.pipeline_mode<synchronous>, transform_indices = @transform_6, window_bounds = array<i64: 128, 128>}, {pipeline_mode = #tpu.pipeline_mode<synchronous>, transform_indices = @transform_7, window_bounds = array<i64: 1, 128>}, {pipeline_mode = #tpu.pipeline_mode<synchronous>, transform_indices = @transform_8, window_bounds = array<i64: 128, 128>}, {pipeline_mode = #tpu.pipeline_mode<synchronous>, transform_indices = @transform_9, window_bounds = array<i64: 1, 128>}, {pipeline_mode = #tpu.pipeline_mode<synchronous>, transform_indices = @transform_10, window_bounds = array<i64: 8, 128>}]} {
    %c0_i32 = arith.constant 0 : i32
    %0 = arith.cmpi eq, %arg0, %c0_i32 : i32
    %1 = arith.extui %0 : i1 to i32
    %c0_i32_0 = arith.constant 0 : i32
    %2 = arith.cmpi ne, %1, %c0_i32_0 : i32
    scf.if %2 {
      %cst_36 = arith.constant 0.000000e+00 : f32
      %55 = vector.broadcast %cst_36 : f32 to vector<8x128xf32>
      %c0_37 = arith.constant 0 : index
      %c0_38 = arith.constant 0 : index
      %56 = vector.load %arg11[%c0_37, %c0_38] : memref<8x128xf32, #tpu.memory_space<vmem>>, vector<8x128xf32>
      tpu.vector_store %arg11[%c0_37, %c0_38], %55 {strides = array<i32>} : memref<8x128xf32, #tpu.memory_space<vmem>>, vector<8x128xf32>,
    } else {
    }
    %c0 = arith.constant 0 : index
    %c0_1 = arith.constant 0 : index
    %3 = vector.load %arg1[%c0, %c0_1] : memref<32x4xf32, #tpu.memory_space<vmem>>, vector<32x4xf32>
    %4 = arith.truncf %3 : vector<32x4xf32> to vector<32x4xbf16>
    %c0_2 = arith.constant 0 : index
    %c0_3 = arith.constant 0 : index
    %5 = vector.load %arg2[%c0_2, %c0_3] : memref<32x3xf32, #tpu.memory_space<vmem>>, vector<32x3xf32>
    %6 = arith.truncf %5 : vector<32x3xf32> to vector<32x3xbf16>
    %c0_4 = arith.constant 0 : index
    %c0_5 = arith.constant 0 : index
    %7 = vector.load %arg4[%c0_4, %c0_5] : memref<4x128xbf16, #tpu.memory_space<vmem>>, vector<4x128xbf16>
    %cst = arith.constant dense<0.000000e+00> : vector<32x128xf32>
    %8 = tpu.matmul %4, %7, %cst {dimension_numbers = #tpu.dot_dimension_numbers<[1], [0], [0], [1], [0, 0, 1, 1], [], []>} : vector<32x4xbf16>, vector<4x128xbf16>, vector<32x128xf32> -> vector<32x128xf32>
    %c0_6 = arith.constant 0 : index
    %c0_7 = arith.constant 0 : index
    %9 = vector.load %arg5[%c0_6, %c0_7] : memref<3x128xbf16, #tpu.memory_space<vmem>>, vector<3x128xbf16>
    %cst_8 = arith.constant dense<0.000000e+00> : vector<32x128xf32>
    %10 = tpu.matmul %6, %9, %cst_8 {dimension_numbers = #tpu.dot_dimension_numbers<[1], [0], [0], [1], [0, 0, 1, 1], [], []>} : vector<32x3xbf16>, vector<3x128xbf16>, vector<32x128xf32> -> vector<32x128xf32>
    %11 = arith.addf %8, %10 : vector<32x128xf32>
    %c0_9 = arith.constant 0 : index
    %c0_10 = arith.constant 0 : index
    %12 = vector.load %arg6[%c0_9, %c0_10] : memref<1x128xf32, #tpu.memory_space<vmem>>, vector<1x128xf32>
    %13 = vector.broadcast %12 : vector<1x128xf32> to vector<32x128xf32>
    %14 = arith.addf %11, %13 : vector<32x128xf32>
    %cst_11 = arith.constant 0.000000e+00 : f32
    %15 = vector.broadcast %cst_11 : f32 to vector<32x128xf32>
    %16 = arith.maximumf %14, %15 : vector<32x128xf32>
    %17 = arith.truncf %16 : vector<32x128xf32> to vector<32x128xbf16>
    %c0_12 = arith.constant 0 : index
    %c0_13 = arith.constant 0 : index
    %18 = vector.load %arg7[%c0_12, %c0_13] : memref<128x128xbf16, #tpu.memory_space<vmem>>, vector<128x128xbf16>
    %cst_14 = arith.constant dense<0.000000e+00> : vector<32x128xf32>
    %19 = tpu.matmul %17, %18, %cst_14 {dimension_numbers = #tpu.dot_dimension_numbers<[1], [0], [0], [1], [0, 0, 1, 1], [], []>} : vector<32x128xbf16>, vector<128x128xbf16>, vector<32x128xf32> -> vector<32x128xf32>
    %c0_15 = arith.constant 0 : index
    %c0_16 = arith.constant 0 : index
    %20 = vector.load %arg8[%c0_15, %c0_16] : memref<1x128xf32, #tpu.memory_space<vmem>>, vector<1x128xf32>
    %21 = vector.broadcast %20 : vector<1x128xf32> to vector<32x128xf32>
    %22 = arith.addf %19, %21 : vector<32x128xf32>
    %cst_17 = arith.constant 0.000000e+00 : f32
    %23 = vector.broadcast %cst_17 : f32 to vector<32x128xf32>
    %24 = arith.maximumf %22, %23 : vector<32x128xf32>
    %25 = arith.truncf %24 : vector<32x128xf32> to vector<32x128xbf16>
    %c0_18 = arith.constant 0 : index
    %c0_19 = arith.constant 0 : index
    %26 = vector.load %arg9[%c0_18, %c0_19] : memref<128x128xbf16, #tpu.memory_space<vmem>>, vector<128x128xbf16>
    %cst_20 = arith.constant dense<0.000000e+00> : vector<32x128xf32>
    %27 = tpu.matmul %25, %26, %cst_20 {dimension_numbers = #tpu.dot_dimension_numbers<[1], [0], [0], [1], [0, 0, 1, 1], [], []>} : vector<32x128xbf16>, vector<128x128xbf16>, vector<32x128xf32> -> vector<32x128xf32>
    %c0_21 = arith.constant 0 : index
    %c0_22 = arith.constant 0 : index
    %28 = vector.load %arg10[%c0_21, %c0_22] : memref<1x128xf32, #tpu.memory_space<vmem>>, vector<1x128xf32>
    %29 = vector.broadcast %28 : vector<1x128xf32> to vector<32x128xf32>
    %30 = arith.addf %27, %29 : vector<32x128xf32>
    %cst_23 = arith.constant 0.000000e+00 : f32
    %31 = vector.broadcast %cst_23 : f32 to vector<32x128xf32>
    %32 = arith.maximumf %30, %31 : vector<32x128xf32>
    %c0_24 = arith.constant 0 : index
    %c0_25 = arith.constant 0 : index
    %33 = vector.load %arg3[%c0_24, %c0_25] : memref<32x1xi32, #tpu.memory_space<vmem>>, vector<32x1xi32>
    %c0_i32_26 = arith.constant 0 : i32
    %34 = vector.broadcast %c0_i32_26 : i32 to vector<32x1xi32>
    %35 = arith.cmpi eq, %33, %34 : vector<32x1xi32>
    %cst_27 = arith.constant 0.000000e+00 : f32
    %36 = vector.shape_cast %35 : vector<32x1xi1> to vector<32x1xi1>
    %37 = vector.broadcast %36 : vector<32x1xi1> to vector<32x128xi1>
    %38 = vector.broadcast %cst_27 : f32 to vector<32x128xf32>
    %39 = arith.select %37, %32, %38 : vector<32x128xi1>, vector<32x128xf32>
    %cst_28 = arith.constant dense<0xFF800000> : vector<128xf32>
    %40 = vector.multi_reduction <maximumf>, %39, %cst_28 [0] : vector<32x128xf32> to vector<128xf32>
    %41 = vector.shape_cast %40 : vector<128xf32> to vector<1x128xf32>
    %c1_i32 = arith.constant 1 : i32
    %42 = vector.broadcast %c1_i32 : i32 to vector<32x1xi32>
    %43 = arith.cmpi eq, %33, %42 : vector<32x1xi32>
    %cst_29 = arith.constant 0.000000e+00 : f32
    %44 = vector.shape_cast %43 : vector<32x1xi1> to vector<32x1xi1>
    %45 = vector.broadcast %44 : vector<32x1xi1> to vector<32x128xi1>
    %46 = vector.broadcast %cst_29 : f32 to vector<32x128xf32>
    %47 = arith.select %45, %32, %46 : vector<32x128xi1>, vector<32x128xf32>
    %cst_30 = arith.constant dense<0xFF800000> : vector<128xf32>
    %48 = vector.multi_reduction <maximumf>, %47, %cst_30 [0] : vector<32x128xf32> to vector<128xf32>
    %49 = vector.shape_cast %48 : vector<128xf32> to vector<1x128xf32>
    %cst_31 = arith.constant 0.000000e+00 : f32
    %50 = vector.broadcast %cst_31 : f32 to vector<6x128xf32>
    %51 = tpu.concatenate %41, %49, %50 in 0 : vector<1x128xf32>, vector<1x128xf32>, vector<6x128xf32> -> vector<8x128xf32>
    %c0_32 = arith.constant 0 : index
    %c0_33 = arith.constant 0 : index
    %52 = vector.load %arg11[%c0_32, %c0_33] : memref<8x128xf32, #tpu.memory_space<vmem>>, vector<8x128xf32>
    %53 = arith.maximumf %52, %51 : vector<8x128xf32>
    %c0_34 = arith.constant 0 : index
    %c0_35 = arith.constant 0 : index
    %54 = vector.load %arg11[%c0_34, %c0_35] : memref<8x128xf32, #tpu.memory_space<vmem>>, vector<8x128xf32>
    tpu.vector_store %arg11[%c0_34, %c0_35], %53 {strides = array<i32>} : memref<8x128xf32, #tpu.memory_space<vmem>>, vector<8x128xf32>,
    return
  }
  func.func @transform_0(%arg0: i32) -> (i32, i32) {
    %c0_i32 = arith.constant 0 : i32
    %c0_i32_0 = arith.constant 0 : i32
    return %arg0, %c0_i32 : i32, i32
  }
  func.func @transform_1(%arg0: i32) -> (i32, i32) {
    %c0_i32 = arith.constant 0 : i32
    %c0_i32_0 = arith.constant 0 : i32
    return %arg0, %c0_i32 : i32, i32
  }
  func.func @transform_2(%arg0: i32) -> (i32, i32) {
    %c0_i32 = arith.constant 0 : i32
    %c0_i32_0 = arith.constant 0 : i32
    return %arg0, %c0_i32 : i32, i32
  }
  func.func @transform_3(%arg0: i32) -> (i32, i32) {
    %c0_i32 = arith.constant 0 : i32
    %c0_i32_0 = arith.constant 0 : i32
    %c0_i32_1 = arith.constant 0 : i32
    return %c0_i32, %c0_i32_0 : i32, i32
  }
  func.func @transform_4(%arg0: i32) -> (i32, i32) {
    %c0_i32 = arith.constant 0 : i32
    %c0_i32_0 = arith.constant 0 : i32
    %c0_i32_1 = arith.constant 0 : i32
    return %c0_i32, %c0_i32_0 : i32, i32
  }
  func.func @transform_5(%arg0: i32) -> (i32, i32) {
    %c0_i32 = arith.constant 0 : i32
    %c0_i32_0 = arith.constant 0 : i32
    %c0_i32_1 = arith.constant 0 : i32
    return %c0_i32, %c0_i32_0 : i32, i32
  }
  func.func @transform_6(%arg0: i32) -> (i32, i32) {
    %c0_i32 = arith.constant 0 : i32
    %c0_i32_0 = arith.constant 0 : i32
    %c0_i32_1 = arith.constant 0 : i32
    return %c0_i32, %c0_i32_0 : i32, i32
  }
  func.func @transform_7(%arg0: i32) -> (i32, i32) {
    %c0_i32 = arith.constant 0 : i32
    %c0_i32_0 = arith.constant 0 : i32
    %c0_i32_1 = arith.constant 0 : i32
    return %c0_i32, %c0_i32_0 : i32, i32
  }
  func.func @transform_8(%arg0: i32) -> (i32, i32) {
    %c0_i32 = arith.constant 0 : i32
    %c0_i32_0 = arith.constant 0 : i32
    %c0_i32_1 = arith.constant 0 : i32
    return %c0_i32, %c0_i32_0 : i32, i32
  }
  func.func @transform_9(%arg0: i32) -> (i32, i32) {
    %c0_i32 = arith.constant 0 : i32
    %c0_i32_0 = arith.constant 0 : i32
    %c0_i32_1 = arith.constant 0 : i32
    return %c0_i32, %c0_i32_0 : i32, i32
  }
  func.func @transform_10(%arg0: i32) -> (i32, i32) {
    %c0_i32 = arith.constant 0 : i32
    %c0_i32_0 = arith.constant 0 : i32
    %c0_i32_1 = arith.constant 0 : i32
    return %c0_i32, %c0_i32_0 : i32, i32
  }
}

</mosaic_0001>

<bundles_post_ra>
// kernel: tpu_custom_call.1
= control target key start
LH: loop header
LB: loop body
LE: loop exit
PB: predicated region body
PF: predicated region fallthrough
CT: control target
= control target key end

     0   :  { %15 = vsyncpa [#allocation3], 0  ;;  %s969_s0 = inlined_call_operand.vmem [shape: f32[32,4], index: 0, kind: input, shape index: {}]   ;;  %s970_s1 = inlined_call_operand.vmem [shape: f32[32,3], index: 1, kind: input, shape index: {}]   ;;  %s971_s2 = inlined_call_operand.vmem [shape: s32[32,1], index: 2, kind: input, shape index: {}]   ;;  %s972_s3 = inlined_call_operand.vmem [shape: bf16[4,128], index: 3, kind: input, shape index: {}]   ;;  %s973_s4 = inlined_call_operand.hbm [shape: bf16[3,128], index: 4, kind: input, shape index: {}]   ;;  %s974_s5 = inlined_call_operand.vmem [shape: f32[1,128], index: 5, kind: input, shape index: {}]   ;;  %s975_s6 = inlined_call_operand.vmem [shape: bf16[128,128], index: 6, kind: input, shape index: {}]   ;;  %s976_s7 = inlined_call_operand.hbm [shape: f32[1,128], index: 7, kind: input, shape index: {}]   ;;  %s977_s8 = inlined_call_operand.vmem [shape: bf16[128,128], index: 8, kind: input, shape index: {}]   ;;  %s978_s9 = inlined_call_operand.vmem [shape: f32[1,128], index: 9, kind: input, shape index: {}]   ;;  %s979_s10 = inlined_call_operand.hbm [shape: f32[8,128], index: 10, kind: output, shape index: {}]  }
   0x1   :  { %16 = vsyncpa [#allocation6], 0 }
   0x2   :  { %17 = vsyncpa [#allocation4], 0  ;;  %s770_s13 = smov [#allocation2]   ;;  %s771_s15 = smov [#allocation5]  }
   0x3   :  { %s32_s14 = sshll.u32 %s770_s13, 4  ;;  %s46_s16 = sshll.u32 %s771_s15, 4  ;;  %s33_s14 = int_to_ptr.vmem [resolvable:$true] %s32_s14  ;;  %s47_s16 = int_to_ptr.vmem [resolvable:$true] %s46_s16 }
   0x4   :  { %s698_s19 = scalar_lea.hbm %s973_s4, 32 }
   0x5   :  { %p699_p0 = scmp.ne.s32.totalorder %s973_s4, %s698_s19  ;;  %p702_p1 = scmp.lt.u32.totalorder %s698_s19, %s973_s4 }
   0x7   :  { %p704_p2 = pnand %p702_p1, %p699_p0 }
   0x9   :  { %707 = shalt.err (!%p704_p2)
}
   0xa   :  { %s708_s24 = scalar_lea.vmem %s33_s14, 32  ;;  %p713_p4 = scmp.lt.s32.totalorder %s33_s14, %s33_s14 }
   0xb   :  { %p709_p3 = scmp.ne.s32.totalorder %s33_s14, %s708_s24  ;;  %p714_p5 = scmp.lt.s32.totalorder %s708_s24, %s708_s24 }
   0xd   :  { %p715_p6 = por %p714_p5, %p713_p4 }
   0xf   :  { %p716_p7 = pnand %p715_p6, %p709_p3 }
  0x11   :  { %719 = shalt.err (!%p716_p7)
}
  0x12   :  { %35 = dma.hbm_to_vmem [thread:$0]  %s973_s4, 32, %s33_s14, [#allocation3]  }
  0x13   :  { %s720_s29 = scalar_lea.hbm %s976_s7, 16 }
  0x14   :  { %p721_p8 = scmp.ne.s32.totalorder %s976_s7, %s720_s29  ;;  %p724_p9 = scmp.lt.u32.totalorder %s720_s29, %s976_s7 }
  0x16   :  { %p726_p10 = pnand %p724_p9, %p721_p8 }
  0x18   :  { %729 = shalt.err (!%p726_p10)
}
  0x19   :  { %s730_s15 = scalar_lea.vmem %s47_s16, 16  ;;  %s734_s17 = scalar_lea.vmem %s47_s16, 32 }
  0x1a   :  { %p731_p11 = scmp.ne.s32.totalorder %s47_s16, %s730_s15  ;;  %p735_p12 = scmp.lt.s32.totalorder %s47_s16, %s47_s16 }
  0x1b   :  { %p736_p13 = scmp.lt.s32.totalorder %s734_s17, %s730_s15 }
  0x1d   :  { %p737_p0 = por %p736_p13, %p735_p12 }
  0x1f   :  { %p738_p1 = pnand %p737_p0, %p731_p11 }
  0x21   :  { %741 = shalt.err (!%p738_p1)
}
  0x22   :  { %49 = dma.hbm_to_vmem [thread:$0]  %s976_s7, 16, %s47_s16, [#allocation6]  }
  0x23   :  { %764 = dma.done.wait [#allocation3], 32  }
  0x24   :  { %765 = vsyncadd [#allocation3], 4294967264 }
  0x25   :  { %766 = dma.done.wait [#allocation6], 16  }
  0x26   :  { %767 = vsyncadd [#allocation6], 4294967280  ;;  %vm87_vm0 = vcmask 1040384   ;;  %vm88_vm1 = vcmask 1041408   ;;  %v772_v0 = vmov 65535   ;;  %v66_v5 = vld [vmem:[%s969_s0] sm:$0xff] }
  0x27   :  { %v89_v1 = vsel %vm87_vm0, 4294967295, %v772_v0  ;;  %v78_v3 = vld [vmem:[%s972_s3] sm:$0x3]  ;;  %v67_v8 = vld [vmem:[%s969_s0 + $0x8] sm:$0xff]  ;;  %vm143_vm2 = vcmask 31744   ;;  %v68_v9 = vld [vmem:[%s969_s0 + $0x10] sm:$0xff] }
  0x28   :  { %v90_v2 = vsel %vm88_vm1, %v89_v1, 0  ;;  %v79_v4 = vld [vmem:[#allocation2] sm:$0x3]  ;;  %673 = vmatprep.subr.msk.bf16.mxu0 %vm88_vm1, %v78_v3  ;;  %v151_v6 = vsel %vm88_vm1, %v78_v3, 0  ;;  %v69_v10 = vld [vmem:[%s969_s0 + $0x18] sm:$0xff]  ;;  %v70_v11 = vpack.c.bf16 %v67_v8, %v66_v5  ;;  %v73_v14 = vld [vmem:[%s970_s1 + $0x8] sm:$0xff] }
  0x29   :  { %v92_v7 = vand.u32 %v90_v2, %v79_v4  ;;  %624 = vmatpush3.bf16.msra.mxu0 %v151_v6  ;;  %v71_v12 = vpack.c.bf16 %v69_v10, %v68_v9  ;;  %v72_v13 = vld [vmem:[%s970_s1] sm:$0xff]  ;;  %vm80_vm3 = vcmask 23552   ;;  %v74_v15 = vld [vmem:[%s970_s1 + $0x10] sm:$0xff]  ;;  %v75_v17 = vld [vmem:[%s970_s1 + $0x18] sm:$0xff]  ;;  %v773_v61 = vmov 0  }
  0x2a   :  { %v76_v16 = vpack.c.bf16 %v73_v14, %v72_v13  ;;  %625 = vmatprep.mubr.msk.bf16.mxu0 %vm143_vm2, %v70_v11  ;;  %v77_v18 = vpack.c.bf16 %v75_v17, %v74_v15  ;;  %v682_v19 = vld [vmem:[%s975_s6] sm:$0xff]   ;;  %v683_v20 = vld [vmem:[%s975_s6 + $0x8] sm:$0xff]   ;;  %v684_v21 = vld [vmem:[%s975_s6 + $0x10] sm:$0xff]   ;;  %681 = vset.pattern.permute.xlu1 %v773_v61 }
  0x2b   :  { %617 = vmatprep.subr.bf16.mxu1 %v92_v7  ;;  %v685_v22 = vld [vmem:[%s975_s6 + $0x18] sm:$0xff]   ;;  %v686_v23 = vld [vmem:[%s975_s6 + $0x20] sm:$0xff]   ;;  %v687_v24 = vld [vmem:[%s975_s6 + $0x28] sm:$0xff]   ;;  %680 = vset.pattern.permute.xlu0 %v773_v61 }
  0x2c   :  { %618 = vmatpush3.bf16.msra.mxu1 %v92_v7  ;;  %626 = vmatmul.mubr.msk.bf16.vlgmr.msra.gmra.mrb[0].mxu0 %vm143_vm2, %v71_v12  ;;  %v688_v25 = vld [vmem:[%s975_s6 + $0x30] sm:$0xff]   ;;  %v689_v26 = vld [vmem:[%s975_s6 + $0x38] sm:$0xff]   ;;  %v690_v27 = vld [vmem:[%s977_s8] sm:$0xff]  }
  0x2d   :  { %619 = vmatprep.mubr.msk.bf16.mxu1 %vm80_vm3, %v76_v16  ;;  %629 = vmatprep.subr.bf16.mxu1 %v682_v19  ;;  %v691_v28 = vld [vmem:[%s977_s8 + $0x8] sm:$0xff]   ;;  %v692_v29 = vld [vmem:[%s977_s8 + $0x10] sm:$0xff]   ;;  %v693_v30 = vld [vmem:[%s977_s8 + $0x18] sm:$0xff]  }
  0x2e   :  { %649 = vmatprep.subr.bf16.mxu0 %v690_v27  ;;  %v694_v31 = vld [vmem:[%s977_s8 + $0x20] sm:$0xff]   ;;  %v695_v32 = vld [vmem:[%s977_s8 + $0x28] sm:$0xff]   ;;  %v696_v56 = vld [vmem:[%s977_s8 + $0x30] sm:$0xff]  }
  0x2f   :  { %620 = vmatmul.mubr.msk.bf16.vlgmr.msra.gmra.mrb[0].mxu1 %vm80_vm3, %v77_v18  ;;  %650 = vmatpush3.bf16.msra.mxu0 %v690_v27  ;;  %v572_v36 = vld [vmem:[%s974_s5] ss:$0 sm:$0xff]  ;;  %v697_v57 = vld [vmem:[%s977_s8 + $0x38] sm:$0xff]   ;;  %v471_v58 = vld [vmem:[%s971_s2 + $0x10] sm:$0xff] }
  0x30   :  { %630 = vmatpush3.bf16.msra.mxu1 %v682_v19  ;;  %651 = vmatprep.subr.bf16.mxu0 %v691_v28  ;;  %v469_v59 = vld [vmem:[%s971_s2] sm:$0xff]  ;;  %v472_v60 = vld [vmem:[%s971_s2 + $0x18] sm:$0xff]  ;;  %vm475_vm4 = vcmp.eq.s32.totalorder %v471_v58, 0  ;;  %v470_v62 = vld [vmem:[%s971_s2 + $0x8] sm:$0xff]  ;;  %vm512_vm11 = vcmp.eq.s32.totalorder %v471_v58, 1 }
  0x31   :  { %631 = vmatprep.subr.bf16.mxu1 %v683_v20  ;;  %vm473_vm5 = vcmp.eq.s32.totalorder %v469_v59, 0  ;;  %vm476_vm6 = vcmp.eq.s32.totalorder %v472_v60, 0  ;;  %v479_v63 = vsel %vm475_vm4, 1, %v773_v61  ;;  %vm474_vm7 = vcmp.eq.s32.totalorder %v470_v62, 0  ;;  %v573_v7 = vld [vmem:[#allocation5] ss:$0 sm:$0xff] }
  0x32   :  { %v477_v0 = vsel %vm473_vm5, 1, %v773_v61  ;;  %488 = vperm.xlu1 %681, %v479_v63   ;;  %v480_v1 = vsel %vm476_vm6, 1, %v773_v61  ;;  %v478_v2 = vsel %vm474_vm7, 1, %v773_v61  ;;  %vm511_vm8 = vcmp.eq.s32.totalorder %v470_v62, 1 }
  0x33   :  { %652 = vmatpush3.bf16.msra.mxu0 %v691_v28  ;;  %482 = vperm.xlu0 %680, %v477_v0   ;;  %vm510_vm9 = vcmp.eq.s32.totalorder %v469_v59, 1  ;;  %v515_v3 = vsel %vm511_vm8, 1, %v773_v61  ;;  %vm513_vm10 = vcmp.eq.s32.totalorder %v472_v60, 1  ;;  %v516_v6 = vsel %vm512_vm11, 1, %v773_v61  ;;  %v582_v28 = vld [vmem:[%s978_s9] ss:$0 sm:$0xff] }
  0x34   :  { %632 = vmatpush3.bf16.msra.mxu1 %v683_v20  ;;  %653 = vmatprep.subr.bf16.mxu0 %v692_v29  ;;  %v514_v4 = vsel %vm510_vm9, 1, %v773_v61  ;;  %v517_v5 = vsel %vm513_vm10, 1, %v773_v61  ;;  %s774_s9 = smov [#allocation7]  }
  0x35   :  { %633 = vmatprep.subr.bf16.mxu1 %v684_v21  ;;  %s558_s3 = sshll.u32 %s774_s9, 4  ;;  %s559_s3 = int_to_ptr.vmem [resolvable:$true] %s558_s3 }
  0x36   :  { %491 = vperm.xlu1 %681, %v480_v1   ;;  %s742_s24 = scalar_lea.vmem %s559_s3, 128  ;;  %p747_p3 = scmp.lt.s32.totalorder %s559_s3, %s559_s3 }
  0x37   :  { %654 = vmatpush3.bf16.msra.mxu0 %v692_v29  ;;  %485 = vperm.xlu0 %680, %v478_v2   ;;  %p743_p2 = scmp.ne.s32.totalorder %s559_s3, %s742_s24  ;;  %p748_p4 = scmp.lt.s32.totalorder %s742_s24, %s742_s24 }
  0x38   :  { %634 = vmatpush3.bf16.msra.mxu1 %v684_v21  ;;  %655 = vmatprep.subr.bf16.mxu0 %v693_v30 }
  0x39   :  { %635 = vmatprep.subr.bf16.mxu1 %v685_v22  ;;  %p749_p5 = por %p748_p4, %p747_p3 }
  0x3a   :  { %522 = vperm.xlu1 %681, %v515_v3  }
  0x3b   :  { %656 = vmatpush3.bf16.msra.mxu0 %v693_v30  ;;  %519 = vperm.xlu0 %680, %v514_v4   ;;  %p750_p6 = pnand %p749_p5, %p743_p2 }
  0x3c   :  { %636 = vmatpush3.bf16.msra.mxu1 %v685_v22  ;;  %657 = vmatprep.subr.bf16.mxu0 %v694_v31 }
  0x3d   :  { %637 = vmatprep.subr.bf16.mxu1 %v686_v23 }
  0x3e   :  { %528 = vperm.xlu1 %681, %v517_v5  }
  0x3f   :  { %658 = vmatpush3.bf16.msra.mxu0 %v694_v31  ;;  %525 = vperm.xlu0 %680, %v516_v6  }
  0x40   :  { %638 = vmatpush3.bf16.msra.mxu1 %v686_v23  ;;  %659 = vmatprep.subr.bf16.mxu0 %v695_v32 }
  0x41   :  { %639 = vmatprep.subr.bf16.mxu1 %v687_v24 }
  0x43   :  { %660 = vmatpush3.bf16.msra.mxu0 %v695_v32 }
  0x44   :  { %640 = vmatpush3.bf16.msra.mxu1 %v687_v24  ;;  %661 = vmatprep.subr.bf16.mxu0 %v696_v56 }
  0x45   :  { %641 = vmatprep.subr.bf16.mxu1 %v688_v25 }
  0x47   :  { %662 = vmatpush3.bf16.msra.mxu0 %v696_v56 }
  0x48   :  { %642 = vmatpush3.bf16.msra.mxu1 %v688_v25  ;;  %663 = vmatprep.subr.bf16.mxu0 %v697_v57 }
  0x49   :  { %643 = vmatprep.subr.bf16.mxu1 %v689_v26 }
  0x4b   :  { %664 = vmatpush3.bf16.msra.mxu0 %v697_v57 }
  0x4c   :  { %644 = vmatpush3.bf16.msra.mxu1 %v689_v26 }
  0xb1   :  { %v489_v23 = vpop.permute.xlu1 %488 }
  0xb2   :  { %v483_v22 = vpop.permute.xlu0 %482  ;;  %vm495_vm12 = vcmp.eq.s32.totalorder %v489_v23, 1 }
  0xb3   :  { %vm493_vm13 = vcmp.eq.s32.totalorder %v483_v22, 1 }
  0xb5   :  { %v492_v25 = vpop.permute.xlu1 %491 }
  0xb6   :  { %v486_v24 = vpop.permute.xlu0 %485  ;;  %vm496_vm14 = vcmp.eq.s32.totalorder %v492_v25, 1 }
  0xb7   :  { %vm494_vm15 = vcmp.eq.s32.totalorder %v486_v24, 1 }
  0xb9   :  { %v523_v27 = vpop.permute.xlu1 %522 }
  0xba   :  { %v520_v26 = vpop.permute.xlu0 %519  ;;  %vm531_vm2 = vcmp.eq.s32.totalorder %v523_v27, 1 }
  0xbb   :  { %vm530_vm3 = vcmp.eq.s32.totalorder %v520_v26, 1 }
  0xbe   :  { %v526_v32 = vpop.permute.xlu0 %525 }
  0xbf   :  { %vm532_vm4 = vcmp.eq.s32.totalorder %v526_v32, 1 }
  0xff   :  { %v627_v33 = vpop.f32.mrb[0].mxu0 }
 0x100   :  { %v187_v34 = vpop.f32.mrb[1].mxu0 }
 0x101   :  { %v628_v37 = vpop.f32.mrb[2].mxu0 }
 0x102   :  { %v621_v35 = vpop.f32.mrb[0].mxu1  ;;  %v190_v40 = vpop.f32.mrb[3].mxu0 }
 0x103   :  { %v196_v38 = vadd.f32 %v627_v33, %v621_v35  ;;  %v128_v39 = vpop.f32.mrb[1].mxu1  ;;  %v529_v35 = vpop.permute.xlu1 %528 }
 0x104   :  { %v188_v41 = vadd.f32 %v187_v34, %v128_v39  ;;  %v622_v42 = vpop.f32.mrb[2].mxu1  ;;  %vm533_vm5 = vcmp.eq.s32.totalorder %v529_v35, 1 }
 0x105   :  { %v211_v43 = vadd.f32 %v572_v36, %v196_v38  ;;  %v199_v44 = vadd.f32 %v628_v37, %v622_v42  ;;  %v131_v45 = vpop.f32.mrb[3].mxu1 }
 0x106   :  { %v209_v46 = vadd.f32 %v572_v36, %v188_v41  ;;  %v191_v47 = vadd.f32 %v190_v40, %v131_v45 }
 0x107   :  { %v212_v48 = vadd.f32 %v572_v36, %v199_v44  ;;  %v215_v50 = vmax.f32 %v211_v43, 0.0 }
 0x108   :  { %v210_v49 = vadd.f32 %v572_v36, %v191_v47  ;;  %v213_v52 = vmax.f32 %v209_v46, 0.0 }
 0x109   :  { %v216_v51 = vmax.f32 %v212_v48, 0.0 }
 0x10a   :  { %v214_v53 = vmax.f32 %v210_v49, 0.0 }
 0x10b   :  { %v218_v54 = vpack.c.bf16 %v216_v51, %v215_v50 }
 0x10c   :  { %v217_v55 = vpack.c.bf16 %v214_v53, %v213_v52 }
 0x10e   :  { %645 = vmatprep.mubr.bf16.mxu1 %v217_v55 }
 0x10f   :  { %646 = vmatmul.mubr.bf16.vlgmr.msra.gmra.mrb[4].mxu1 %v218_v54 }
 0x1e2   :  { %v647_v8 = vpop.f32.mrb[4].mxu1 }
 0x1e3   :  { %v333_v9 = vadd.f32 %v647_v8, %v573_v7  ;;  %v324_v10 = vpop.f32.mrb[5].mxu1 }
 0x1e4   :  { %v325_v11 = vadd.f32 %v573_v7, %v324_v10  ;;  %v648_v12 = vpop.f32.mrb[6].mxu1 }
 0x1e5   :  { %v336_v13 = vadd.f32 %v648_v12, %v573_v7  ;;  %v327_v14 = vpop.f32.mrb[7].mxu1  ;;  %v341_v16 = vmax.f32 %v333_v9, 0.0 }
 0x1e6   :  { %v328_v15 = vadd.f32 %v573_v7, %v327_v14  ;;  %v339_v18 = vmax.f32 %v325_v11, 0.0 }
 0x1e7   :  { %v342_v17 = vmax.f32 %v336_v13, 0.0 }
 0x1e8   :  { %v340_v19 = vmax.f32 %v328_v15, 0.0 }
 0x1e9   :  { %v344_v20 = vpack.c.bf16 %v342_v17, %v341_v16 }
 0x1ea   :  { %v343_v21 = vpack.c.bf16 %v340_v19, %v339_v18 }
 0x1ec   :  { %665 = vmatprep.mubr.bf16.mxu0 %v343_v21 }
 0x1ed   :  { %666 = vmatmul.mubr.bf16.vlgmr.msra.gmra.mrb[4].mxu0 %v344_v20 }
 0x2c0   :  { %v667_v29 = vpop.f32.mrb[4].mxu0 }
 0x2c1   :  { %v459_v30 = vadd.f32 %v667_v29, %v582_v28  ;;  %v450_v31 = vpop.f32.mrb[5].mxu0 }
 0x2c2   :  { %v451_v33 = vadd.f32 %v582_v28, %v450_v31  ;;  %v668_v34 = vpop.f32.mrb[6].mxu0 }
 0x2c3   :  { %v467_v36 = vmax.f32 %v459_v30, 0.0  ;;  %v462_v37 = vadd.f32 %v668_v34, %v582_v28  ;;  %v453_v38 = vpop.f32.mrb[7].mxu0 }
 0x2c4   :  { %v465_v39 = vmax.f32 %v451_v33, 0.0  ;;  %v454_v40 = vadd.f32 %v582_v28, %v453_v38 }
 0x2c5   :  { %v468_v41 = vmax.f32 %v462_v37, 0.0  ;;  %v499_v42 = vsel %vm495_vm12, %v467_v36, 0.0  ;;  %v536_v43 = vsel %vm532_vm4, %v467_v36, 0.0 }
 0x2c6   :  { %v466_v44 = vmax.f32 %v454_v40, 0.0  ;;  %v497_v45 = vsel %vm493_vm13, %v465_v39, 0.0  ;;  %v534_v46 = vsel %vm530_vm3, %v465_v39, 0.0 }
 0x2c7   :  { %v500_v47 = vsel %vm496_vm14, %v468_v41, 0.0  ;;  %v537_v48 = vsel %vm533_vm5, %v468_v41, 0.0 }
 0x2c8   :  { %v502_v49 = vmax.f32 %v499_v42, %v500_v47  ;;  %v539_v50 = vmax.f32 %v536_v43, %v537_v48  ;;  %v498_v51 = vsel %vm494_vm15, %v466_v44, 0.0  ;;  %v535_v52 = vsel %vm531_vm2, %v466_v44, 0.0 }
 0x2c9   :  { %v501_v53 = vmax.f32 %v497_v45, %v498_v51  ;;  %v538_v54 = vmax.f32 %v534_v46, %v535_v52 }
 0x2cb   :  { %v503_v55 = vmax.f32 %v501_v53, %v502_v49  ;;  %v540_v56 = vmax.f32 %v538_v54, %v539_v50 }
 0x2cd   :  { %v504_v57 = vrot.slane %v503_v55, 4  ;;  %v541_v58 = vrot.slane %v540_v56, 4 }
 0x2cf   :  { %v505_v59 = vmax.f32 %v503_v55, %v504_v57  ;;  %v542_v60 = vmax.f32 %v540_v56, %v541_v58 }
 0x2d1   :  { %v506_v61 = vrot.slane %v505_v59, 2  ;;  %v543_v62 = vrot.slane %v542_v60, 2 }
 0x2d3   :  { %v507_v63 = vmax.f32 %v505_v59, %v506_v61  ;;  %v544_v0 = vmax.f32 %v542_v60, %v543_v62 }
 0x2d5   :  { %v508_v1 = vrot.slane %v507_v63, 1  ;;  %v545_v2 = vrot.slane %v544_v0, 1 }
 0x2d7   :  { %v509_v3 = vmax.f32 %v507_v63, %v508_v1  ;;  %v546_v4 = vmax.f32 %v544_v0, %v545_v2 }
 0x2d9   :  { %v547_v5 = vsel %vm87_vm0, %v509_v3, %v546_v4 }
 0x2da   :  { %v548_v6 = vsel %vm88_vm1, %v547_v5, 0.0 }
 0x2db   :  { %v550_v7 = vmax.f32 %v548_v6, 0.0 }
 0x2dd   :  { %551 = vst [vmem:[#allocation7] sm:$0xff] %v550_v7 }
 0x2de   :  { %753 = shalt.err (!%p750_p6)
}
 0x2df   :  { %s754_s27 = scalar_lea.hbm %s979_s10, 128 }
 0x2e0   :  { %p755_p7 = scmp.ne.s32.totalorder %s979_s10, %s754_s27  ;;  %p758_p8 = scmp.lt.u32.totalorder %s754_s27, %s979_s10 }
 0x2e2   :  { %p760_p9 = pnand %p758_p8, %p755_p7 }
 0x2e4   :  { %763 = shalt.err (!%p760_p9)
}
 0x2e5   :  { %561 = dma.vmem_to_hbm [thread:$0]  %s559_s3, 128, %s979_s10, [#allocation4]  }
 0x2e6   :  { %768 = dma.done.wait [#allocation4], 128  }
 0x2e7   :  { %769 = vsyncadd [#allocation4], 4294967168 }
 0x2e8   :  { %565 = vsyncpa [#allocation3], 1 }
 0x2e9   :  { %566 = vsyncpa [#allocation6], 1 }
 0x2ea   :  { %567 = vsyncpa [#allocation4], 1 }

</bundles_post_ra>
